<compile_context>
chip_gen: v7x
topology: tpu7x:2x2x1
jax: 0.10.0
libtpu: 0.0.40
codegen_flags: <defaults>
</compile_context>

<pallas_src>
import functools

import jax
import jax.numpy as jnp
import numpy as np
from jax.experimental import pallas as pl
from jax.experimental.pallas import tpu as pltpu


def _round_up(x, m):
    return ((x + m - 1) // m) * m


def _pick_nb(n, l, target_rows=256):
    """Smallest divisor of n whose row count Nb*L is sublane-aligned and >= target."""
    best = n
    for d in range(1, n + 1):
        if n % d:
            continue
        rows = d * l
        if rows % 8 != 0 and d != n:
            continue
        best = d
        if rows >= target_rows:
            break
    return best


def _basic_block_kernel(x_ref, w1_ref, w2_ref, b1_ref, b2_ref,
                        mprev_ref, mnext_ref, o_ref):
    x = x_ref[...]              # (M, Cp) f32, Nb samples of length L stacked on rows
    mprev = mprev_ref[...]      # (M, 1) f32: 0.0 on the first row of each sample
    mnext = mnext_ref[...]      # (M, 1) f32: 0.0 on the last  row of each sample
    m = x.shape[0]

    def conv_bn(a, w_ref, b_ref):
        # Shifted copies via XLU rotation; boundary rows zeroed by the masks so the
        # 3-tap window never leaks across packed samples (== zero padding).
        a_prev = pltpu.roll(a, shift=1, axis=0) * mprev        # a[l-1]
        a_next = pltpu.roll(a, shift=m - 1, axis=0) * mnext    # a[l+1]
        slab = jnp.concatenate([a_prev, a, a_next], axis=-1).astype(jnp.bfloat16)
        out = jnp.dot(slab, w_ref[...], preferred_element_type=jnp.float32)
        return out + b_ref[...]                                # BN folded: bias only

    h = jnp.maximum(conv_bn(x, w1_ref, b1_ref), 0.0)           # conv1 + bn1 + relu
    h = conv_bn(h, w2_ref, b2_ref)                             # conv2 + bn2
    o_ref[...] = jnp.maximum(h + x, 0.0).astype(o_ref.dtype)   # residual + relu


def basic_block_1d(x_ncl, w1, w2, bn1, bn2, eps=1e-5):
    """x_ncl: (N, C, L); w1/w2: (Cout, Cin, 3) PyTorch Conv1d weights (bias=False);
    bn = (gamma, beta, running_mean, running_var)."""
    N, C, L = x_ncl.shape
    Cout = w1.shape[0]
    assert Cout == C and w2.shape == (Cout, Cout, 3), \
        "residual path requires inplanes == planes, stride == 1 (no downsample)"

    Cp = _round_up(C, 128)          # padded Cin  (lane-dense)
    Cop = _round_up(Cout, 128)      # padded Cout (lane-dense output stores)
    Nb = _pick_nb(N, L)             # samples packed per grid step (fills MXU M dim)
    M = Nb * L
    grid = (N // Nb,)

    # --- activations: NCL -> NLC, pad channels, flatten (sample, position) rows ---
    # TODO(synk): if the surrounding model can carry NLC activations, drop these
    #             transposes (they are pure HBM traffic outside the kernel).
    x = jnp.transpose(x_ncl, (0, 2, 1)).astype(jnp.float32)
    x = jnp.pad(x, ((0, 0), (0, 0), (0, Cp - C)))
    x2d = x.reshape(N * L, Cp)

    # --- fold eval-mode BN into conv weights (scale) and a per-channel bias ---
    def fold(bn):
        gamma, beta, mean, var = bn
        scale = gamma * jax.lax.rsqrt(var.astype(jnp.float32) + eps)
        bias = beta - mean * scale
        return scale, bias

    s1, bias1 = fold(bn1)
    s2, bias2 = fold(bn2)

    def prep_w(w, scale):
        wf = w.astype(jnp.float32) * scale[:, None, None]     # fold BN scale (per Cout)
        wk = jnp.transpose(wf, (2, 1, 0))                     # (3, Cin, Cout), tap-major
        wk = jnp.pad(wk, ((0, 0), (0, Cp - w.shape[1]), (0, Cop - w.shape[0])))
        return wk.reshape(3 * Cp, Cop).astype(jnp.bfloat16)   # im2col weight slab

    w1k = prep_w(w1, s1)
    w2k = prep_w(w2, s2)
    b1k = jnp.pad(bias1.astype(jnp.float32), (0, Cop - Cout)).reshape(1, Cop)
    b2k = jnp.pad(bias2.astype(jnp.float32), (0, Cop - Cout)).reshape(1, Cop)

    # --- per-block sample-boundary halo masks (same for every grid step) ---
    pos = np.arange(M) % L
    mprev = jnp.asarray((pos != 0).astype(np.float32).reshape(M, 1))
    mnext = jnp.asarray((pos != L - 1).astype(np.float32).reshape(M, 1))

    flops = 2 * 2 * (N * L) * (3 * Cp) * Cop            # two im2col matmuls
    bytes_accessed = (x2d.size * 4 + (N * L) * Cop * 4
                      + (w1k.size + w2k.size) * 2 + (b1k.size + b2k.size) * 4)

    out = pl.pallas_call(
        _basic_block_kernel,
        out_shape=jax.ShapeDtypeStruct((N * L, Cop), jnp.float32),
        grid_spec=pltpu.PrefetchScalarGridSpec(
            num_scalar_prefetch=0,
            grid=grid,
            in_specs=[
                pl.BlockSpec((M, Cp), lambda i: (i, 0)),          # x rows (Nb samples)
                pl.BlockSpec((3 * Cp, Cop), lambda i: (0, 0)),    # conv1 weight slab
                pl.BlockSpec((3 * Cp, Cop), lambda i: (0, 0)),    # conv2 weight slab
                pl.BlockSpec((1, Cop), lambda i: (0, 0)),         # bn1 bias
                pl.BlockSpec((1, Cop), lambda i: (0, 0)),         # bn2 bias
                pl.BlockSpec((M, 1), lambda i: (0, 0)),           # halo mask (prev)
                pl.BlockSpec((M, 1), lambda i: (0, 0)),           # halo mask (next)
            ],
            out_specs=pl.BlockSpec((M, Cop), lambda i: (i, 0)),
        ),
        compiler_params=pltpu.CompilerParams(
            dimension_semantics=("parallel",),
            vmem_limit_bytes=32 * 1024 * 1024,
        ),
        cost_estimate=pl.CostEstimate(
            flops=flops, transcendentals=0, bytes_accessed=bytes_accessed),
    )(x2d, w1k, w2k, b1k, b2k, mprev, mnext)

    out = out[:, :Cout].reshape(N, L, Cout)
    return jnp.transpose(out, (0, 2, 1)).astype(x_ncl.dtype)


def _reference(x, w1, w2, bn1, bn2, eps=1e-5):
    def conv(a, w):
        return jax.lax.conv_general_dilated(
            a, w, window_strides=(1,), padding=[(1, 1)],
            dimension_numbers=("NCH", "OIH", "NCH"))

    def bn(a, p):
        g, b, m, v = p
        return (a - m[None, :, None]) / jnp.sqrt(v[None, :, None] + eps) \
            * g[None, :, None] + b[None, :, None]

    h = jax.nn.relu(bn(conv(x, w1), bn1))
    h = bn(conv(h, w2), bn2)
    return jax.nn.relu(h + x)


if __name__ == "__main__":
    N, C, L = 2, 4, 16                      # inplanes = planes = 4, stride = 1
    key = jax.random.PRNGKey(0)
    ks = jax.random.split(key, 12)

    x = jax.random.normal(ks[0], (N, C, L), jnp.float32)
    w1 = jax.random.normal(ks[1], (C, C, 3), jnp.float32) * 0.2
    w2 = jax.random.normal(ks[2], (C, C, 3), jnp.float32) * 0.2

    bn1 = (
        jax.random.uniform(ks[3], (C,), minval=0.5, maxval=1.5),    # gamma
        jax.random.normal(ks[4], (C,), jnp.float32) * 0.1,           # beta
        jax.random.normal(ks[5], (C,), jnp.float32) * 0.1,           # running_mean
        jnp.abs(jax.random.normal(ks[6], (C,), jnp.float32)) + 0.5,  # running_var
    )
    bn2 = (
        jax.random.uniform(ks[7], (C,), minval=0.5, maxval=1.5),
        jax.random.normal(ks[8], (C,), jnp.float32) * 0.1,
        jax.random.normal(ks[9], (C,), jnp.float32) * 0.1,
        jnp.abs(jax.random.normal(ks[10], (C,), jnp.float32)) + 0.5,
    )

    out = jax.block_until_ready(basic_block_1d(x, w1, w2, bn1, bn2))
    ref = _reference(x, w1, w2, bn1, bn2)

    # Tolerance reflects bf16 MXU operands (f32 accumulation) vs the f32 reference.
    np.testing.assert_allclose(np.asarray(out), np.asarray(ref), rtol=2e-2, atol=2e-2)

    print("KERNEL_OK")
</pallas_src>

<mosaic_0001>
module attributes {stable_mosaic.version = 11 : i64} {
  func.func @_basic_block_kernel(%arg0: i32, %arg1: memref<32x128xf32, #tpu.memory_space<vmem>>, %arg2: memref<384x128xbf16, #tpu.memory_space<vmem>>, %arg3: memref<384x128xbf16, #tpu.memory_space<vmem>>, %arg4: memref<1x128xf32, #tpu.memory_space<vmem>>, %arg5: memref<1x128xf32, #tpu.memory_space<vmem>>, %arg6: memref<32x1xf32, #tpu.memory_space<vmem>>, %arg7: memref<32x1xf32, #tpu.memory_space<vmem>>, %arg8: memref<32x128xf32, #tpu.memory_space<vmem>>) attributes {dimension_semantics = [#tpu.dimension_semantics<parallel>], iteration_bounds = array<i64: 1>, scalar_prefetch = 0 : i64, scratch_operands = 0 : i64, tpu.core_type = #tpu.core_type<tc>, window_params = [{transform_indices = @transform_0, window_bounds = array<i64: 32, 128>}, {pipeline_mode = #tpu.pipeline_mode<synchronous>, transform_indices = @transform_1, window_bounds = array<i64: 384, 128>}, {pipeline_mode = #tpu.pipeline_mode<synchronous>, transform_indices = @transform_2, window_bounds = array<i64: 384, 128>}, {pipeline_mode = #tpu.pipeline_mode<synchronous>, transform_indices = @transform_3, window_bounds = array<i64: 1, 128>}, {pipeline_mode = #tpu.pipeline_mode<synchronous>, transform_indices = @transform_4, window_bounds = array<i64: 1, 128>}, {pipeline_mode = #tpu.pipeline_mode<synchronous>, transform_indices = @transform_5, window_bounds = array<i64: 32, 1>}, {pipeline_mode = #tpu.pipeline_mode<synchronous>, transform_indices = @transform_6, window_bounds = array<i64: 32, 1>}, {transform_indices = @transform_7, window_bounds = array<i64: 32, 128>}]} {
    %c0 = arith.constant 0 : index
    %c0_0 = arith.constant 0 : index
    %0 = vector.load %arg1[%c0, %c0_0] : memref<32x128xf32, #tpu.memory_space<vmem>>, vector<32x128xf32>
    %c0_1 = arith.constant 0 : index
    %c0_2 = arith.constant 0 : index
    %1 = vector.load %arg6[%c0_1, %c0_2] : memref<32x1xf32, #tpu.memory_space<vmem>>, vector<32x1xf32>
    %c0_3 = arith.constant 0 : index
    %c0_4 = arith.constant 0 : index
    %2 = vector.load %arg7[%c0_3, %c0_4] : memref<32x1xf32, #tpu.memory_space<vmem>>, vector<32x1xf32>
    %c1_i32 = arith.constant 1 : i32
    %3 = tpu.dynamic_rotate %0 by %c1_i32 dim 0 : vector<32x128xf32>, i32 -> vector<32x128xf32>
    %4 = vector.broadcast %1 : vector<32x1xf32> to vector<32x128xf32>
    %5 = arith.mulf %3, %4 : vector<32x128xf32>
    %c31_i32 = arith.constant 31 : i32
    %6 = tpu.dynamic_rotate %0 by %c31_i32 dim 0 : vector<32x128xf32>, i32 -> vector<32x128xf32>
    %7 = vector.broadcast %2 : vector<32x1xf32> to vector<32x128xf32>
    %8 = arith.mulf %6, %7 : vector<32x128xf32>
    %9 = tpu.concatenate %5, %0, %8 in 1 : vector<32x128xf32>, vector<32x128xf32>, vector<32x128xf32> -> vector<32x384xf32>
    %10 = arith.truncf %9 : vector<32x384xf32> to vector<32x384xbf16>
    %c0_5 = arith.constant 0 : index
    %c0_6 = arith.constant 0 : index
    %11 = vector.load %arg2[%c0_5, %c0_6] : memref<384x128xbf16, #tpu.memory_space<vmem>>, vector<384x128xbf16>
    %cst = arith.constant dense<0.000000e+00> : vector<32x128xf32>
    %12 = tpu.matmul %10, %11, %cst {dimension_numbers = #tpu.dot_dimension_numbers<[1], [0], [0], [1], [0, 0, 1, 1], [], []>} : vector<32x384xbf16>, vector<384x128xbf16>, vector<32x128xf32> -> vector<32x128xf32>
    %c0_7 = arith.constant 0 : index
    %c0_8 = arith.constant 0 : index
    %13 = vector.load %arg4[%c0_7, %c0_8] : memref<1x128xf32, #tpu.memory_space<vmem>>, vector<1x128xf32>
    %14 = vector.broadcast %13 : vector<1x128xf32> to vector<32x128xf32>
    %15 = arith.addf %12, %14 : vector<32x128xf32>
    %cst_9 = arith.constant 0.000000e+00 : f32
    %16 = vector.broadcast %cst_9 : f32 to vector<32x128xf32>
    %17 = arith.maximumf %15, %16 : vector<32x128xf32>
    %c1_i32_10 = arith.constant 1 : i32
    %18 = tpu.dynamic_rotate %17 by %c1_i32_10 dim 0 : vector<32x128xf32>, i32 -> vector<32x128xf32>
    %19 = vector.broadcast %1 : vector<32x1xf32> to vector<32x128xf32>
    %20 = arith.mulf %18, %19 : vector<32x128xf32>
    %c31_i32_11 = arith.constant 31 : i32
    %21 = tpu.dynamic_rotate %17 by %c31_i32_11 dim 0 : vector<32x128xf32>, i32 -> vector<32x128xf32>
    %22 = vector.broadcast %2 : vector<32x1xf32> to vector<32x128xf32>
    %23 = arith.mulf %21, %22 : vector<32x128xf32>
    %24 = tpu.concatenate %20, %17, %23 in 1 : vector<32x128xf32>, vector<32x128xf32>, vector<32x128xf32> -> vector<32x384xf32>
    %25 = arith.truncf %24 : vector<32x384xf32> to vector<32x384xbf16>
    %c0_12 = arith.constant 0 : index
    %c0_13 = arith.constant 0 : index
    %26 = vector.load %arg3[%c0_12, %c0_13] : memref<384x128xbf16, #tpu.memory_space<vmem>>, vector<384x128xbf16>
    %cst_14 = arith.constant dense<0.000000e+00> : vector<32x128xf32>
    %27 = tpu.matmul %25, %26, %cst_14 {dimension_numbers = #tpu.dot_dimension_numbers<[1], [0], [0], [1], [0, 0, 1, 1], [], []>} : vector<32x384xbf16>, vector<384x128xbf16>, vector<32x128xf32> -> vector<32x128xf32>
    %c0_15 = arith.constant 0 : index
    %c0_16 = arith.constant 0 : index
    %28 = vector.load %arg5[%c0_15, %c0_16] : memref<1x128xf32, #tpu.memory_space<vmem>>, vector<1x128xf32>
    %29 = vector.broadcast %28 : vector<1x128xf32> to vector<32x128xf32>
    %30 = arith.addf %27, %29 : vector<32x128xf32>
    %31 = arith.addf %30, %0 : vector<32x128xf32>
    %cst_17 = arith.constant 0.000000e+00 : f32
    %32 = vector.broadcast %cst_17 : f32 to vector<32x128xf32>
    %33 = arith.maximumf %31, %32 : vector<32x128xf32>
    %c0_18 = arith.constant 0 : index
    %c0_19 = arith.constant 0 : index
    %34 = vector.load %arg8[%c0_18, %c0_19] : memref<32x128xf32, #tpu.memory_space<vmem>>, vector<32x128xf32>
    tpu.vector_store %arg8[%c0_18, %c0_19], %33 {strides = array<i32>} : memref<32x128xf32, #tpu.memory_space<vmem>>, vector<32x128xf32>,
    return
  }
  func.func @transform_0(%arg0: i32) -> (i32, i32) {
    %c0_i32 = arith.constant 0 : i32
    %c0_i32_0 = arith.constant 0 : i32
    return %arg0, %c0_i32 : i32, i32
  }
  func.func @transform_1(%arg0: i32) -> (i32, i32) {
    %c0_i32 = arith.constant 0 : i32
    %c0_i32_0 = arith.constant 0 : i32
    %c0_i32_1 = arith.constant 0 : i32
    return %c0_i32, %c0_i32_0 : i32, i32
  }
  func.func @transform_2(%arg0: i32) -> (i32, i32) {
    %c0_i32 = arith.constant 0 : i32
    %c0_i32_0 = arith.constant 0 : i32
    %c0_i32_1 = arith.constant 0 : i32
    return %c0_i32, %c0_i32_0 : i32, i32
  }
  func.func @transform_3(%arg0: i32) -> (i32, i32) {
    %c0_i32 = arith.constant 0 : i32
    %c0_i32_0 = arith.constant 0 : i32
    %c0_i32_1 = arith.constant 0 : i32
    return %c0_i32, %c0_i32_0 : i32, i32
  }
  func.func @transform_4(%arg0: i32) -> (i32, i32) {
    %c0_i32 = arith.constant 0 : i32
    %c0_i32_0 = arith.constant 0 : i32
    %c0_i32_1 = arith.constant 0 : i32
    return %c0_i32, %c0_i32_0 : i32, i32
  }
  func.func @transform_5(%arg0: i32) -> (i32, i32) {
    %c0_i32 = arith.constant 0 : i32
    %c0_i32_0 = arith.constant 0 : i32
    %c0_i32_1 = arith.constant 0 : i32
    return %c0_i32, %c0_i32_0 : i32, i32
  }
  func.func @transform_6(%arg0: i32) -> (i32, i32) {
    %c0_i32 = arith.constant 0 : i32
    %c0_i32_0 = arith.constant 0 : i32
    %c0_i32_1 = arith.constant 0 : i32
    return %c0_i32, %c0_i32_0 : i32, i32
  }
  func.func @transform_7(%arg0: i32) -> (i32, i32) {
    %c0_i32 = arith.constant 0 : i32
    %c0_i32_0 = arith.constant 0 : i32
    return %arg0, %c0_i32 : i32, i32
  }
}

</mosaic_0001>

<bundles_post_ra>
// kernel: tpu_custom_call.1
= control target key start
LH: loop header
LB: loop body
LE: loop exit
PB: predicated region body
PF: predicated region fallthrough
CT: control target
= control target key end

     0   :  { %12 = vsyncpa [#allocation3], 0  ;;  %s1314_s0 = inlined_call_operand.vmem [shape: f32[32,128], index: 0, kind: input, shape index: {}]   ;;  %s1315_s1 = inlined_call_operand.hbm [shape: bf16[384,128], index: 1, kind: input, shape index: {}]   ;;  %s1316_s2 = inlined_call_operand.hbm [shape: bf16[384,128], index: 2, kind: input, shape index: {}]   ;;  %s1317_s3 = inlined_call_operand.vmem [shape: f32[1,128], index: 3, kind: input, shape index: {}]   ;;  %s1318_s4 = inlined_call_operand.vmem [shape: f32[1,128], index: 4, kind: input, shape index: {}]   ;;  %s1319_s5 = inlined_call_operand.vmem [shape: f32[32,1], index: 5, kind: input, shape index: {}]   ;;  %s1320_s6 = inlined_call_operand.vmem [shape: f32[32,1], index: 6, kind: input, shape index: {}]   ;;  %s1321_s7 = inlined_call_operand.hbm [shape: f32[32,128], index: 7, kind: output, shape index: {}]  }
   0x1   :  { %13 = vsyncpa [#allocation6], 0 }
   0x2   :  { %14 = vsyncpa [#allocation4], 0  ;;  %s1096_s24 = smov [#allocation2]   ;;  %s1024_s28 = scalar_lea.hbm %s1315_s1, 3072 }
   0x3   :  { %s22_s25 = sshll.u32 %s1096_s24, 4  ;;  %p1025_p0 = scmp.ne.s32.totalorder %s1315_s1, %s1024_s28  ;;  %s23_s25 = int_to_ptr.vmem [resolvable:$true] %s22_s25 }
   0x4   :  { %p1028_p1 = scmp.lt.u32.totalorder %s1024_s28, %s1315_s1 }
   0x6   :  { %p1030_p2 = pnand %p1028_p1, %p1025_p0 }
   0x8   :  { %1033 = shalt.err (!%p1030_p2)
}
   0x9   :  { %s1034_s10 = scalar_lea.vmem %s23_s25, 3072  ;;  %p1039_p4 = scmp.lt.s32.totalorder %s23_s25, %s23_s25 }
   0xa   :  { %p1035_p3 = scmp.ne.s32.totalorder %s23_s25, %s1034_s10  ;;  %p1040_p5 = scmp.lt.s32.totalorder %s1034_s10, %s1034_s10 }
   0xc   :  { %p1041_p6 = por %p1040_p5, %p1039_p4 }
   0xe   :  { %p1042_p7 = pnand %p1041_p6, %p1035_p3 }
  0x10   :  { %1045 = shalt.err (!%p1042_p7)
}
  0x11   :  { %s1097_s11 = smov 64   ;;  %s1098_s12 = smov 4  }
  0x12   :  { %28 = dma.hbm_to_vmem [thread:$0]  %s1315_s1, 3072, %s23_s25, [#allocation3], %s1097_s11, %s1097_s11, %s1098_s12  }
  0x13   :  { %s1099_s15 = smov [#allocation5]   ;;  %s1046_s19 = scalar_lea.hbm %s1316_s2, 3072 }
  0x14   :  { %s34_s16 = sshll.u32 %s1099_s15, 4  ;;  %p1047_p8 = scmp.ne.s32.totalorder %s1316_s2, %s1046_s19  ;;  %s35_s16 = int_to_ptr.vmem [resolvable:$true] %s34_s16 }
  0x15   :  { %p1050_p9 = scmp.lt.u32.totalorder %s1046_s19, %s1316_s2 }
  0x17   :  { %p1052_p10 = pnand %p1050_p9, %p1047_p8 }
  0x19   :  { %1055 = shalt.err (!%p1052_p10)
}
  0x1a   :  { %s1056_s24 = scalar_lea.vmem %s35_s16, 3072  ;;  %p1061_p12 = scmp.lt.s32.totalorder %s35_s16, %s35_s16 }
  0x1b   :  { %p1057_p11 = scmp.ne.s32.totalorder %s35_s16, %s1056_s24  ;;  %p1062_p13 = scmp.lt.s32.totalorder %s1056_s24, %s1056_s24 }
  0x1d   :  { %p1063_p0 = por %p1062_p13, %p1061_p12 }
  0x1f   :  { %p1064_p1 = pnand %p1063_p0, %p1057_p11 }
  0x21   :  { %1067 = shalt.err (!%p1064_p1)
}
  0x22   :  { %40 = dma.hbm_to_vmem [thread:$0]  %s1316_s2, 3072, %s35_s16, [#allocation6], %s1097_s11, %s1097_s11, %s1098_s12  }
  0x23   :  { %1090 = dma.done.wait [#allocation3], 3072  }
  0x24   :  { %1091 = vsyncadd [#allocation3], 4294964224 }
  0x25   :  { %1092 = dma.done.wait [#allocation6], 3072  }
  0x26   :  { %1093 = vsyncadd [#allocation6], 4294964224  ;;  %v1100_v0 = vmov 0   ;;  %v62_v1 = vld [vmem:[%s1319_s5 + $0x10] sm:$0xff]  ;;  %v60_v2 = vld [vmem:[%s1319_s5] sm:$0xff]  ;;  %v72_v38 = vlaneseq }
  0x27   :  { %975 = vset.pattern.permute.xlu1 %v1100_v0  ;;  %974 = vset.pattern.permute.xlu0 %v1100_v0  ;;  %v63_v3 = vld [vmem:[%s1319_s5 + $0x18] sm:$0xff]  ;;  %v61_v4 = vld [vmem:[%s1319_s5 + $0x8] sm:$0xff]  ;;  %v976_v5 = vld [vmem:[#allocation2 + $0x40] sm:$0xff]  }
  0x28   :  { %91 = vperm.xlu1 %975, %v62_v1   ;;  %81 = vperm.xlu0 %974, %v60_v2   ;;  %v65_v6 = vld [vmem:[%s1320_s6 + $0x8] sm:$0xff]  ;;  %v64_v7 = vld [vmem:[%s1320_s6] sm:$0xff]  ;;  %v980_v11 = vld [vmem:[#allocation2 + $0x50] sm:$0xff]   ;;  %v1204_v39 = vshrl.u32 %v72_v38, 7 }
  0x29   :  { %v977_v8 = vld [vmem:[#allocation2] sm:$0xff]   ;;  %v978_v9 = vld [vmem:[#allocation2 + $0x48] sm:$0xff]   ;;  %850 = vmatprep.subr.bf16.mxu0 %v976_v5  ;;  %v67_v12 = vld [vmem:[%s1320_s6 + $0x18] sm:$0xff] }
  0x2a   :  { %v979_v10 = vld [vmem:[#allocation2 + $0x8] sm:$0xff]   ;;  %851 = vmatpush3.bf16.msra.mxu0 %v977_v8  ;;  %v981_v13 = vld [vmem:[#allocation2 + $0x80] sm:$0xff]   ;;  %v66_v14 = vld [vmem:[%s1320_s6 + $0x10] sm:$0xff]  ;;  %vm74_vm0 = vcmp.lt.s32.totalorder %v1204_v39, 1  ;;  %vm107_vm1 = vcmp.lt.s32.totalorder %v1204_v39, 7 }
  0x2b   :  { %852 = vmatprep.subr.bf16.mxu0 %v978_v9  ;;  %926 = vmatprep.subr.bf16.mxu1 %v981_v13  ;;  %v982_v15 = vld [vmem:[#allocation2 + $0x10] sm:$0xff]   ;;  %v984_v16 = vld [vmem:[#allocation2 + $0x88] sm:$0xff]   ;;  %v983_v17 = vld [vmem:[#allocation2 + $0x58] sm:$0xff]  }
  0x2c   :  { %96 = vperm.xlu1 %975, %v63_v3   ;;  %86 = vperm.xlu0 %974, %v61_v4   ;;  %v987_v18 = vld [vmem:[#allocation2 + $0x90] sm:$0xff]   ;;  %v985_v19 = vld [vmem:[#allocation2 + $0x18] sm:$0xff]   ;;  %v986_v20 = vld [vmem:[#allocation2 + $0x60] sm:$0xff]  }
  0x2d   :  { %927 = vmatpush3.bf16.msra.mxu1 %v981_v13  ;;  %v990_v21 = vld [vmem:[#allocation2 + $0x98] sm:$0xff]   ;;  %v988_v22 = vld [vmem:[#allocation2 + $0x20] sm:$0xff]   ;;  %v1195_v23 = vld [vmem:[%s1314_s0 + $0x8] sm:$0xff] }
  0x2e   :  { %853 = vmatpush3.bf16.msra.mxu0 %v979_v10  ;;  %928 = vmatprep.subr.bf16.mxu1 %v984_v16  ;;  %v1200_v24 = vld [vmem:[%s1314_s0] sm:$0xff]  ;;  %v989_v25 = vld [vmem:[#allocation2 + $0x68] sm:$0xff]   ;;  %v992_v29 = vld [vmem:[#allocation2 + $0x70] sm:$0xff]   ;;  %v69_v41 = vrot.slane %v1195_v23, 7  ;;  %v104_v47 = vrot.slane %v1195_v23, 1 }
  0x2f   :  { %854 = vmatprep.subr.bf16.mxu0 %v980_v11  ;;  %v137_v26 = vpack.c.bf16 %v1195_v23, %v1200_v24  ;;  %v993_v27 = vld [vmem:[#allocation2 + $0xa0] sm:$0xff]   ;;  %v991_v28 = vld [vmem:[#allocation2 + $0x28] sm:$0xff]   ;;  %v994_v31 = vld [vmem:[#allocation2 + $0x30] sm:$0xff]   ;;  %v68_v42 = vrot.slane %v1200_v24, 7  ;;  %v103_v51 = vrot.slane %v1200_v24, 1 }
  0x30   :  { %119 = vperm.xlu1 %975, %v65_v6   ;;  %114 = vperm.xlu0 %974, %v64_v7   ;;  %v996_v30 = vld [vmem:[#allocation2 + $0xa8] sm:$0xff]   ;;  %v995_v32 = vld [vmem:[#allocation2 + $0x78] sm:$0xff]   ;;  %v998_v33 = vld [vmem:[#allocation2 + $0xb0] sm:$0xff]  }
  0x31   :  { %929 = vmatpush3.bf16.msra.mxu1 %v984_v16  ;;  %373 = vmatprep.mubr.bf16.mxu0 %v137_v26  ;;  %v997_v34 = vld [vmem:[#allocation2 + $0x38] sm:$0xff]   ;;  %v1000_v36 = vld [vmem:[#allocation5 + $0x40] sm:$0xff]   ;;  %v1222_v46 = vld [vmem:[%s1314_s0 + $0x10] sm:$0xff]  ;;  %v77_v49 = vsel %vm74_vm0, %v68_v42, %v69_v41  ;;  %v110_v58 = vsel %vm107_vm1, %v103_v51, %v104_v47 }
  0x32   :  { %855 = vmatpush3.bf16.msra.mxu0 %v982_v15  ;;  %930 = vmatprep.subr.bf16.mxu1 %v987_v18  ;;  %v999_v35 = vld [vmem:[#allocation2 + $0xb8] sm:$0xff]   ;;  %v1001_v37 = vld [vmem:[#allocation5 + $0x80] sm:$0xff]   ;;  %v105_v50 = vrot.slane %v1222_v46, 1  ;;  %v70_v52 = vrot.slane %v1222_v46, 7  ;;  %v1003_v63 = vld [vmem:[#allocation5 + $0x48] sm:$0xff]  }
  0x33   :  { %856 = vmatprep.subr.bf16.mxu0 %v983_v17  ;;  %v1209_v40 = vld [vmem:[%s1314_s0 + $0x18] sm:$0xff]  ;;  %v1002_v61 = vld [vmem:[#allocation5] sm:$0xff]   ;;  %v1004_v17 = vld [vmem:[#allocation5 + $0x88] sm:$0xff]  }
  0x34   :  { %129 = vperm.xlu1 %975, %v67_v12   ;;  %124 = vperm.xlu0 %974, %v66_v14   ;;  %v71_v43 = vrot.slane %v1209_v40, 7  ;;  %v109_v57 = vsel %vm107_vm1, %v104_v47, %v105_v50  ;;  %v106_v59 = vrot.slane %v1209_v40, 1  ;;  %v140_v60 = vpack.c.bf16 %v1209_v40, %v1222_v46  ;;  %v1011_v26 = vld [vmem:[#allocation5 + $0x18] sm:$0xff]  }
  0x35   :  { %931 = vmatpush3.bf16.msra.mxu1 %v987_v18  ;;  %v76_v0 = vsel %vm74_vm0, %v69_v41, %v70_v52  ;;  %v1005_v18 = vld [vmem:[#allocation5 + $0x8] sm:$0xff]   ;;  %v1023_v38 = vld [vmem:[#allocation5 + $0x38] sm:$0xff]  }
  0x36   :  { %857 = vmatpush3.bf16.msra.mxu0 %v985_v19  ;;  %932 = vmatprep.subr.bf16.mxu1 %v990_v21  ;;  %v78_v48 = vsel %vm74_vm0, %v71_v43, %v68_v42  ;;  %v75_v1 = vsel %vm74_vm0, %v70_v52, %v71_v43  ;;  %v111_v6 = vsel %vm107_vm1, %v106_v59, %v103_v51  ;;  %v1006_v19 = vld [vmem:[#allocation5 + $0x50] sm:$0xff]  }
  0x37   :  { %858 = vmatprep.subr.bf16.mxu0 %v986_v20  ;;  %v108_v7 = vsel %vm107_vm1, %v105_v50, %v106_v59  ;;  %v1007_v20 = vld [vmem:[#allocation5 + $0x90] sm:$0xff]   ;;  %v800_v50 = vld [vmem:[%s1317_s3] ss:$0 sm:$0xff] }
  0x39   :  { %933 = vmatpush3.bf16.msra.mxu1 %v990_v21  ;;  %v1008_v21 = vld [vmem:[#allocation5 + $0x10] sm:$0xff]  }
  0x3a   :  { %859 = vmatpush3.bf16.msra.mxu0 %v988_v22  ;;  %934 = vmatprep.subr.bf16.mxu1 %v993_v27  ;;  %v1009_v22 = vld [vmem:[#allocation5 + $0x58] sm:$0xff]  }
  0x3b   :  { %860 = vmatprep.subr.bf16.mxu0 %v989_v25  ;;  %v1010_v25 = vld [vmem:[#allocation5 + $0x98] sm:$0xff]  }
  0x3d   :  { %935 = vmatpush3.bf16.msra.mxu1 %v993_v27  ;;  %v1012_v27 = vld [vmem:[#allocation5 + $0x60] sm:$0xff]  }
  0x3e   :  { %861 = vmatpush3.bf16.msra.mxu0 %v991_v28  ;;  %936 = vmatprep.subr.bf16.mxu1 %v996_v30  ;;  %v1013_v28 = vld [vmem:[#allocation5 + $0xa0] sm:$0xff]  }
  0x3f   :  { %862 = vmatprep.subr.bf16.mxu0 %v992_v29  ;;  %v1014_v29 = vld [vmem:[#allocation5 + $0x20] sm:$0xff]  }
  0x41   :  { %937 = vmatpush3.bf16.msra.mxu1 %v996_v30  ;;  %v1015_v30 = vld [vmem:[#allocation5 + $0x68] sm:$0xff]  }
  0x42   :  { %863 = vmatpush3.bf16.msra.mxu0 %v994_v31  ;;  %938 = vmatprep.subr.bf16.mxu1 %v998_v33  ;;  %v1016_v31 = vld [vmem:[#allocation5 + $0xa8] sm:$0xff]  }
  0x43   :  { %864 = vmatprep.subr.bf16.mxu0 %v995_v32  ;;  %v1017_v32 = vld [vmem:[#allocation5 + $0x28] sm:$0xff]  }
  0x45   :  { %939 = vmatpush3.bf16.msra.mxu1 %v998_v33  ;;  %v1018_v33 = vld [vmem:[#allocation5 + $0x70] sm:$0xff]  }
  0x46   :  { %865 = vmatpush3.bf16.msra.mxu0 %v997_v34  ;;  %940 = vmatprep.subr.bf16.mxu1 %v999_v35  ;;  %v1019_v34 = vld [vmem:[#allocation5 + $0xb0] sm:$0xff]  }
  0x47   :  { %888 = vmatprep.subr.bf16.mxu0 %v1000_v36  ;;  %v1021_v36 = vld [vmem:[#allocation5 + $0x78] sm:$0xff]  }
  0x49   :  { %941 = vmatpush3.bf16.msra.mxu1 %v999_v35  ;;  %v1020_v35 = vld [vmem:[#allocation5 + $0x30] sm:$0xff]  }
  0x4a   :  { %946 = vmatprep.subr.bf16.mxu1 %v1001_v37 }
  0xa7   :  { %v1215_v44 = vpop.permute.xlu1 %91  ;;  %v1217_v45 = vpop.permute.xlu0 %81 }
  0xa8   :  { %v99_v55 = vmul.f32 %v1217_v45, %v78_v48  ;;  %v101_v8 = vmul.f32 %v1215_v44, %v76_v0 }
  0xab   :  { %v1233_v53 = vpop.permute.xlu1 %96  ;;  %v1235_v54 = vpop.permute.xlu0 %86 }
  0xac   :  { %v100_v56 = vmul.f32 %v1235_v54, %v77_v49  ;;  %v102_v9 = vmul.f32 %v1233_v53, %v75_v1 }
  0xae   :  { %v136_v62 = vpack.c.bf16 %v100_v56, %v99_v55  ;;  %v139_v15 = vpack.c.bf16 %v102_v9, %v101_v8 }
  0xaf   :  { %v1250_v2 = vpop.permute.xlu1 %119  ;;  %v1252_v3 = vpop.permute.xlu0 %114 }
  0xb0   :  { %v133_v4 = vmul.f32 %v1250_v2, %v109_v57  ;;  %v132_v5 = vmul.f32 %v1252_v3, %v110_v58  ;;  %374 = vmatmul.mubr.bf16.vlgmr.msra.gmra.mrb[0].mxu0 %v136_v62 }
  0xb1   :  { %381 = vmatprep.mubr.bf16.mxu0 %v140_v60  ;;  %889 = vmatpush3.bf16.msra.mxu0 %v1002_v61 }
  0xb2   :  { %v138_v10 = vpack.c.bf16 %v133_v4, %v132_v5  ;;  %890 = vmatprep.subr.bf16.mxu0 %v1003_v63 }
  0xb3   :  { %v1262_v11 = vpop.permute.xlu1 %129  ;;  %v1264_v12 = vpop.permute.xlu0 %124 }
  0xb4   :  { %v135_v13 = vmul.f32 %v1262_v11, %v111_v6  ;;  %v134_v14 = vmul.f32 %v1264_v12, %v108_v7  ;;  %942 = vmatprep.mubr.bf16.mxu1 %v138_v10 }
  0xb5   :  { %891 = vmatpush3.bf16.msra.mxu0 %v1005_v18 }
  0xb6   :  { %v141_v16 = vpack.c.bf16 %v135_v13, %v134_v14  ;;  %892 = vmatprep.subr.bf16.mxu0 %v1006_v19 }
  0xb8   :  { %382 = vmatmul.mubr.bf16.gmra.mrb[4].mxu0 %v139_v15  ;;  %943 = vmatmul.mubr.bf16.vlgmr.msra.gmra.mrb[0].mxu1 %v141_v16 }
  0xb9   :  { %947 = vmatpush3.bf16.msra.mxu1 %v1001_v37  ;;  %893 = vmatpush3.bf16.msra.mxu0 %v1008_v21  ;;  %v1022_v37 = vld [vmem:[#allocation5 + $0xb8] sm:$0xff]  }
  0xba   :  { %948 = vmatprep.subr.bf16.mxu1 %v1004_v17  ;;  %894 = vmatprep.subr.bf16.mxu0 %v1009_v22 }
  0xbd   :  { %949 = vmatpush3.bf16.msra.mxu1 %v1004_v17  ;;  %895 = vmatpush3.bf16.msra.mxu0 %v1011_v26 }
  0xbe   :  { %950 = vmatprep.subr.bf16.mxu1 %v1007_v20  ;;  %896 = vmatprep.subr.bf16.mxu0 %v1012_v27 }
  0xc1   :  { %951 = vmatpush3.bf16.msra.mxu1 %v1007_v20  ;;  %897 = vmatpush3.bf16.msra.mxu0 %v1014_v29 }
  0xc2   :  { %952 = vmatprep.subr.bf16.mxu1 %v1010_v25  ;;  %898 = vmatprep.subr.bf16.mxu0 %v1015_v30 }
  0xc5   :  { %953 = vmatpush3.bf16.msra.mxu1 %v1010_v25  ;;  %899 = vmatpush3.bf16.msra.mxu0 %v1017_v32 }
  0xc6   :  { %954 = vmatprep.subr.bf16.mxu1 %v1013_v28  ;;  %900 = vmatprep.subr.bf16.mxu0 %v1018_v33 }
  0xc9   :  { %955 = vmatpush3.bf16.msra.mxu1 %v1013_v28  ;;  %901 = vmatpush3.bf16.msra.mxu0 %v1020_v35 }
  0xca   :  { %956 = vmatprep.subr.bf16.mxu1 %v1016_v31  ;;  %902 = vmatprep.subr.bf16.mxu0 %v1021_v36 }
  0xcd   :  { %957 = vmatpush3.bf16.msra.mxu1 %v1016_v31  ;;  %903 = vmatpush3.bf16.msra.mxu0 %v1023_v38 }
  0xce   :  { %958 = vmatprep.subr.bf16.mxu1 %v1019_v34 }
  0xd1   :  { %959 = vmatpush3.bf16.msra.mxu1 %v1019_v34 }
  0xd2   :  { %960 = vmatprep.subr.bf16.mxu1 %v1022_v37 }
  0xd5   :  { %961 = vmatpush3.bf16.msra.mxu1 %v1022_v37 }
 0x183   :  { %v866_v41 = vpop.f32.mrb[0].mxu0 }
 0x184   :  { %v867_v42 = vpop.f32.mrb[1].mxu0 }
 0x185   :  { %v868_v43 = vadd.f32 %v867_v42, %v866_v41  ;;  %v869_v47 = vpop.f32.mrb[2].mxu0 }
 0x186   :  { %v870_v48 = vpop.f32.mrb[3].mxu0 }
 0x187   :  { %v871_v49 = vadd.f32 %v870_v48, %v869_v47  ;;  %v376_v55 = vadd.f32 %v868_v43, %v800_v50 }
 0x189   :  { %v379_v62 = vadd.f32 %v871_v49, %v800_v50 }
 0x18b   :  { %v872_v51 = vpop.f32.mrb[4].mxu0  ;;  %v944_v52 = vpop.f32.mrb[0].mxu1 }
 0x18c   :  { %v873_v56 = vpop.f32.mrb[5].mxu0  ;;  %v424_v57 = vpop.f32.mrb[1].mxu1 }
 0x18d   :  { %v874_v58 = vadd.f32 %v873_v56, %v872_v51  ;;  %v425_v59 = vadd.f32 %v424_v57, %v376_v55  ;;  %v875_v60 = vpop.f32.mrb[6].mxu0  ;;  %v945_v61 = vpop.f32.mrb[2].mxu1 }
 0x18e   :  { %v876_v63 = vpop.f32.mrb[7].mxu0  ;;  %v427_v0 = vpop.f32.mrb[3].mxu1 }
 0x18f   :  { %v384_v1 = vadd.f32 %v874_v58, %v800_v50  ;;  %v439_v4 = vmax.f32 %v425_v59, 0.0  ;;  %v877_v5 = vadd.f32 %v876_v63, %v875_v60  ;;  %v428_v6 = vadd.f32 %v427_v0, %v379_v62 }
 0x191   :  { %v433_v7 = vadd.f32 %v944_v52, %v384_v1  ;;  %v387_v8 = vadd.f32 %v877_v5, %v800_v50  ;;  %v440_v9 = vmax.f32 %v428_v6, 0.0  ;;  %v443_v13 = vrot.slane %v439_v4, 7 }
 0x192   :  { %v455_v15 = vrot.slane %v439_v4, 1 }
 0x193   :  { %v441_v10 = vmax.f32 %v433_v7, 0.0  ;;  %v436_v14 = vadd.f32 %v945_v61, %v387_v8  ;;  %v444_v16 = vrot.slane %v440_v9, 7  ;;  %v456_v17 = vrot.slane %v440_v9, 1 }
 0x194   :  { %v468_v18 = vpack.c.bf16 %v440_v9, %v439_v4 }
 0x195   :  { %v445_v19 = vrot.slane %v441_v10, 7  ;;  %v457_v20 = vrot.slane %v441_v10, 1  ;;  %v442_v21 = vmax.f32 %v436_v14, 0.0  ;;  %v449_v22 = vsel %vm74_vm0, %v443_v13, %v444_v16 }
 0x196   :  { %704 = vmatprep.mubr.bf16.mxu0 %v468_v18  ;;  %v461_v25 = vsel %vm107_vm1, %v455_v15, %v456_v17  ;;  %v452_v28 = vmul.f32 %v449_v22, %v1235_v54 }
 0x197   :  { %v446_v26 = vrot.slane %v442_v21, 7  ;;  %v458_v27 = vrot.slane %v442_v21, 1  ;;  %v460_v29 = vsel %vm107_vm1, %v456_v17, %v457_v20  ;;  %v463_v30 = vmul.f32 %v461_v25, %v1252_v3 }
 0x198   :  { %v464_v31 = vmul.f32 %v460_v29, %v1250_v2  ;;  %v471_v32 = vpack.c.bf16 %v442_v21, %v441_v10  ;;  %v448_v33 = vsel %vm74_vm0, %v444_v16, %v445_v19 }
 0x199   :  { %v450_v34 = vsel %vm74_vm0, %v446_v26, %v443_v13  ;;  %v459_v35 = vsel %vm107_vm1, %v457_v20, %v458_v27  ;;  %v462_v54 = vsel %vm107_vm1, %v458_v27, %v455_v15  ;;  %v447_v36 = vsel %vm74_vm0, %v445_v19, %v446_v26 }
 0x19a   :  { %v469_v37 = vpack.c.bf16 %v464_v31, %v463_v30  ;;  %v451_v3 = vmul.f32 %v450_v34, %v1217_v45  ;;  %v465_v2 = vmul.f32 %v459_v35, %v1264_v12  ;;  %v466_v38 = vmul.f32 %v462_v54, %v1262_v11  ;;  %v825_v45 = vld [vmem:[%s1318_s4] ss:$0 sm:$0xff]  ;;  %s1101_s4 = smov [#allocation7]  }
 0x19b   :  { %v453_v41 = vmul.f32 %v448_v33, %v1215_v44  ;;  %v454_v42 = vmul.f32 %v447_v36, %v1233_v53  ;;  %s787_s25 = sshll.u32 %s1101_s4, 4  ;;  %s788_s25 = int_to_ptr.vmem [resolvable:$true] %s787_s25 }
 0x19c   :  { %962 = vmatprep.mubr.bf16.mxu1 %v469_v37  ;;  %v467_v43 = vpack.c.bf16 %v452_v28, %v451_v3  ;;  %v472_v47 = vpack.c.bf16 %v466_v38, %v465_v2  ;;  %s1068_s26 = scalar_lea.vmem %s788_s25, 512  ;;  %p1073_p3 = scmp.lt.s32.totalorder %s788_s25, %s788_s25 }
 0x19d   :  { %v470_v48 = vpack.c.bf16 %v454_v42, %v453_v41  ;;  %p1069_p2 = scmp.ne.s32.totalorder %s788_s25, %s1068_s26  ;;  %p1074_p4 = scmp.lt.s32.totalorder %s1068_s26, %s1068_s26 }
 0x19e   :  { %705 = vmatmul.mubr.bf16.vlgmr.msra.gmra.mrb[8].mxu0 %v467_v43  ;;  %963 = vmatmul.mubr.bf16.vlgmr.msra.gmra.mrb[4].mxu1 %v472_v47 }
 0x19f   :  { %712 = vmatprep.mubr.bf16.mxu0 %v471_v32  ;;  %p1075_p5 = por %p1074_p4, %p1073_p3 }
 0x1a1   :  { %p1076_p6 = pnand %p1075_p5, %p1069_p2 }
 0x1a6   :  { %713 = vmatmul.mubr.bf16.gmra.mrb[12].mxu0 %v470_v48 }
 0x271   :  { %v904_v39 = vpop.f32.mrb[8].mxu0  ;;  %v964_v49 = vpop.f32.mrb[4].mxu1 }
 0x272   :  { %v905_v50 = vpop.f32.mrb[9].mxu0  ;;  %v755_v11 = vpop.f32.mrb[5].mxu1 }
 0x273   :  { %v906_v12 = vadd.f32 %v905_v50, %v904_v39  ;;  %v907_v44 = vpop.f32.mrb[10].mxu0  ;;  %v965_v51 = vpop.f32.mrb[6].mxu1 }
 0x274   :  { %v908_v53 = vpop.f32.mrb[11].mxu0  ;;  %v758_v52 = vpop.f32.mrb[7].mxu1 }
 0x275   :  { %v707_v55 = vadd.f32 %v906_v12, %v825_v45  ;;  %v909_v56 = vadd.f32 %v908_v53, %v907_v44 }
 0x277   :  { %v756_v57 = vadd.f32 %v755_v11, %v707_v55  ;;  %v710_v58 = vadd.f32 %v909_v56, %v825_v45 }
 0x279   :  { %v770_v59 = vadd.f32 %v756_v57, %v1200_v24  ;;  %v759_v60 = vadd.f32 %v758_v52, %v710_v58  ;;  %v910_v61 = vpop.f32.mrb[12].mxu0 }
 0x27a   :  { %v911_v62 = vpop.f32.mrb[13].mxu0 }
 0x27b   :  { %v774_v63 = vmax.f32 %v770_v59, 0.0  ;;  %v771_v0 = vadd.f32 %v759_v60, %v1195_v23  ;;  %v912_v1 = vadd.f32 %v911_v62, %v910_v61  ;;  %v913_v4 = vpop.f32.mrb[14].mxu0 }
 0x27c   :  { %v914_v5 = vpop.f32.mrb[15].mxu0 }
 0x27d   :  { %778 = vst [vmem:[#allocation7] sm:$0xff] %v774_v63  ;;  %v775_v6 = vmax.f32 %v771_v0, 0.0  ;;  %v715_v7 = vadd.f32 %v912_v1, %v825_v45  ;;  %v915_v8 = vadd.f32 %v914_v5, %v913_v4 }
 0x27f   :  { %779 = vst [vmem:[#allocation7 + $0x8] sm:$0xff] %v775_v6  ;;  %v764_v9 = vadd.f32 %v964_v49, %v715_v7  ;;  %v718_v10 = vadd.f32 %v915_v8, %v825_v45 }
 0x281   :  { %v772_v13 = vadd.f32 %v764_v9, %v1222_v46  ;;  %v767_v14 = vadd.f32 %v965_v51, %v718_v10 }
 0x283   :  { %v776_v24 = vmax.f32 %v772_v13, 0.0  ;;  %v773_v15 = vadd.f32 %v767_v14, %v1209_v40 }
 0x285   :  { %780 = vst [vmem:[#allocation7 + $0x10] sm:$0xff] %v776_v24  ;;  %v777_v23 = vmax.f32 %v773_v15, 0.0 }
 0x287   :  { %781 = vst [vmem:[#allocation7 + $0x18] sm:$0xff] %v777_v23 }
 0x288   :  { %1079 = shalt.err (!%p1076_p6)
}
 0x289   :  { %s1080_s29 = scalar_lea.hbm %s1321_s7, 512 }
 0x28a   :  { %p1081_p7 = scmp.ne.s32.totalorder %s1321_s7, %s1080_s29  ;;  %p1084_p8 = scmp.lt.u32.totalorder %s1080_s29, %s1321_s7 }
 0x28c   :  { %p1086_p9 = pnand %p1084_p8, %p1081_p7 }
 0x28e   :  { %1089 = shalt.err (!%p1086_p9)
}
 0x28f   :  { %s1102_s10 = smov 128   ;;  %s1103_s11 = smov 8  }
 0x290   :  { %793 = dma.vmem_to_hbm [thread:$0]  %s788_s25, 512, %s1321_s7, [#allocation4], %s1102_s10, %s1102_s10, %s1103_s11  }
 0x291   :  { %1094 = dma.done.wait [#allocation4], 512  }
 0x292   :  { %1095 = vsyncadd [#allocation4], 4294966784 }
 0x293   :  { %797 = vsyncpa [#allocation3], 1 }
 0x294   :  { %798 = vsyncpa [#allocation6], 1 }
 0x295   :  { %799 = vsyncpa [#allocation4], 1 }

</bundles_post_ra>
